<compile_context>
chip_gen: v7x
topology: tpu7x:2x2x1
jax: 0.10.0
libtpu: 0.0.40
codegen_flags: <defaults>
</compile_context>

<pallas_src>
import jax
import jax.numpy as jnp
from jax import lax
from jax.experimental import pallas as pl
from jax.experimental.pallas import tpu as pltpu

# ---- hyperparameters (small, consistent with the module's forward) ----
VOCAB   = 50
VOCAB_P = 64      # vocab padded to a lane-friendly size for the one-hot gather
EMB     = 32      # embedding size
HID     = 32      # text_model.hidden_size
LABELS  = 8       # labels_num
KSZ     = 3       # conv kernel size ("same" padding)
SEQ     = 16      # sequence length
BATCH   = 2
N       = BATCH * SEQ

PAD_L = (KSZ - 1) // 2
PAD_R = KSZ - 1 - PAD_L

# ---- packed weight-slab layout (all sections start at a multiple of 8 rows) ----
W_COLS  = HID                      # 32 columns for every section
R_T0    = 0                        # KSZ tables T_k = emb @ wconv[k], (VOCAB_P, HID) each
R_BCONV = KSZ * VOCAB_P            # 192: conv bias row (1, HID)
R_WLAB  = R_BCONV + 8              # 200: fused label weights (HID, 2*LABELS) in cols 0:16
R_BOUT  = R_WLAB + HID             # 232: output bias, tiled per batch, cols 0:BATCH*LABELS
W_ROWS  = R_BOUT + 8               # 240 rows total (~30 KiB)


def lwan_text_kernel(ids_ref, w_ref, out_ref):
    # ids_ref : (N, 1)          int32 token ids, batch folded into rows
    # w_ref   : (W_ROWS, W_COLS) packed f32 weight slab (see layout above)
    # out_ref : (1, BATCH*LABELS) lane-dense logits
    ids = ids_ref[...]                                            # (N, 1) int32

    # token-id -> one-hot row (ids >= VOCAB_P would silently map to a zero
    # embedding; the synthetic vocab is 50 < 64 so this cannot trigger here)
    vocab_iota = lax.broadcasted_iota(jnp.int32, (N, VOCAB_P), 1)
    one_hot = (vocab_iota == ids).astype(jnp.float32)             # (N, VOCAB_P)
    pos = lax.broadcasted_iota(jnp.int32, (N, 1), 0) % SEQ        # position in example

    # --- Conv1d("same") with the embedding folded in: h = sum_k shift_k(one_hot) @ T_k
    h = None
    for k in range(KSZ):                                          # static -> unrolled
        d = k - PAD_L
        if d == 0:
            oh_k = one_hot
        else:
            # row n of oh_k must hold one_hot[n + d]; wrapped / cross-example rows
            # are zeroed by the position-validity mask.
            oh_k = pltpu.roll(one_hot, shift=(PAD_L - k) % N, axis=0)
            valid = jnp.logical_and(pos + d >= 0, pos + d < SEQ)  # (N, 1)
            oh_k = jnp.where(valid, oh_k, 0.0)
        t_k = w_ref[k * VOCAB_P:(k + 1) * VOCAB_P, :]             # (VOCAB_P, HID)
        contrib = jnp.dot(oh_k, t_k, preferred_element_type=jnp.float32)
        h = contrib if h is None else h + contrib                 # accumulating matmuls
    bconv = w_ref[R_BCONV:R_BCONV + 1, :]                         # (1, HID)
    h = jnp.maximum(h + bconv, 0.0)                               # (N, HID)

    # --- LWAttention: one fused matmul gives scores|slab (cols 0:8 | 8:16) ---
    wlab = w_ref[R_WLAB:R_WLAB + HID, :]                          # (HID, 32), cols 16:32 zero
    sl = jnp.dot(h, wlab, preferred_element_type=jnp.float32)     # (N, 32)
    scores = sl[:, 0:LABELS]                                      # (N, LABELS) = h @ watt
    slab = sl[:, LABELS:2 * LABELS]                               # (N, LABELS) = h @ wout^T
    scores = jnp.where(ids != 0, scores, -1e30)                   # in-kernel pad mask

    # masked softmax over the sequence + per-label head, per folded example
    num_parts, den_parts = [], []
    for b in range(BATCH):                                        # static -> unrolled
        sc_b = scores[b * SEQ:(b + 1) * SEQ, :]                   # (SEQ, LABELS), 8-aligned
        sl_b = slab[b * SEQ:(b + 1) * SEQ, :]
        m_b = jnp.max(sc_b, axis=0, keepdims=True)                # (1, LABELS)
        e_b = jnp.exp(sc_b - m_b)
        num_parts.append(jnp.sum(e_b * sl_b, axis=0, keepdims=True))
        den_parts.append(jnp.sum(e_b, axis=0, keepdims=True))
    num = jnp.concatenate(num_parts, axis=1)                      # (1, BATCH*LABELS)
    den = jnp.concatenate(den_parts, axis=1)                      # (1, BATCH*LABELS)

    inv = pl.reciprocal(den, approx=True)                         # EUP slot
    inv = inv * (2.0 - den * inv)                                 # one Newton step
    bout = w_ref[R_BOUT:R_BOUT + 1, 0:BATCH * LABELS]             # (1, BATCH*LABELS)
    out_ref[...] = num * inv + bout                               # single lane-dense store


def lwan_text_forward(input_ids, kparams):
    # Per-call wrapper work is only free metadata reshapes of ids / logits.
    ids_col = input_ids.reshape(N, 1).astype(jnp.int32)
    out = pl.pallas_call(
        lwan_text_kernel,
        out_shape=jax.ShapeDtypeStruct((1, BATCH * LABELS), jnp.float32),
        # No grid: whole (tiny) operands are resident in VMEM, single-buffered,
        # two input DMAs total, no pipeline prologue.
    )(ids_col, kparams["wslab"])
    return out.reshape(BATCH, LABELS)


def init_params(key):
    # Canonical (module-like) layouts; used by the pure-JAX reference.
    k1, k2, k3, k4, k5, k6 = jax.random.split(key, 6)
    emb = 0.1 * jax.random.normal(k1, (VOCAB, EMB), jnp.float32)
    emb = emb.at[0].set(0.0)                                      # padding_idx = 0
    return {
        "embedding": emb,
        "wconv": 0.1 * jax.random.normal(k2, (KSZ, EMB, HID), jnp.float32),
        "bconv": 0.01 * jax.random.normal(k3, (1, HID), jnp.float32),
        "watt_t": 0.1 * jax.random.normal(k4, (HID, LABELS), jnp.float32),
        "wout": 0.1 * jax.random.normal(k5, (LABELS, HID), jnp.float32),
        "bout": 0.01 * jax.random.normal(k6, (LABELS,), jnp.float32),
    }


def prepare_kernel_params(params):
    # One-time weight prep (outside the per-call path): fold the embedding into the
    # conv taps and pack every weight into ONE f32 slab (single DMA at call time).
    emb_p = jnp.zeros((VOCAB_P, EMB), jnp.float32).at[:VOCAB, :].set(params["embedding"])
    slab = jnp.zeros((W_ROWS, W_COLS), jnp.float32)
    for k in range(KSZ):
        t_k = emb_p @ params["wconv"][k]                          # (VOCAB_P, HID)
        slab = slab.at[k * VOCAB_P:(k + 1) * VOCAB_P, :].set(t_k)
    slab = slab.at[R_BCONV, :HID].set(params["bconv"][0])
    wlab = jnp.concatenate([params["watt_t"], params["wout"].T], axis=1)  # (HID, 2*LABELS)
    slab = slab.at[R_WLAB:R_WLAB + HID, :2 * LABELS].set(wlab)
    slab = slab.at[R_BOUT, :BATCH * LABELS].set(jnp.tile(params["bout"], (BATCH,)))
    return {"wslab": slab}


def ref_forward(input_ids, params):
    # Pure-JAX reference of the original forward pass (for correctness check).
    x = params["embedding"][input_ids]
    mask = (input_ids != 0).astype(jnp.float32)
    xp = jnp.pad(x, ((0, 0), (PAD_L, PAD_R), (0, 0)))
    h = jnp.zeros((input_ids.shape[0], SEQ, HID), jnp.float32)
    for k in range(KSZ):
        h = h + jnp.einsum("ble,eh->blh", xp[:, k:k + SEQ], params["wconv"][k])
    h = jax.nn.relu(h + params["bconv"])
    scores = jnp.einsum("blh,hk->blk", h, params["watt_t"])
    scores = jnp.where(mask[..., None] > 0.0, scores, -1e30)
    att = jax.nn.softmax(scores, axis=1)
    ctx = jnp.einsum("blk,blh->bkh", att, h)
    return jnp.sum(ctx * params["wout"][None], axis=-1) + params["bout"][None]


if __name__ == "__main__":
    key = jax.random.PRNGKey(0)
    pkey, ikey = jax.random.split(key)
    params = init_params(pkey)
    kparams = prepare_kernel_params(params)

    input_ids = jax.random.randint(ikey, (BATCH, SEQ), 1, VOCAB, dtype=jnp.int32)
    input_ids = input_ids.at[1, -4:].set(0)   # some padding in the second example

    logits = jax.block_until_ready(lwan_text_forward(input_ids, kparams))
    ref = jax.block_until_ready(ref_forward(input_ids, params))

    assert logits.shape == (BATCH, LABELS), logits.shape
    assert jnp.allclose(logits, ref, atol=5e-4, rtol=5e-4), (logits, ref)
    # TODO(synk): LSTMTextModel variant of the TEXT_MODEL union (recurrent encoder)
    # not implemented; the ConvTextModel branch is used.
    print("KERNEL_OK")
</pallas_src>

<mosaic_0001>
module attributes {stable_mosaic.version = 11 : i64} {
  func.func @lwan_text_kernel(%arg0: memref<32x1xi32, #tpu.memory_space<vmem>>, %arg1: memref<240x32xf32, #tpu.memory_space<vmem>>, %arg2: memref<1x16xf32, #tpu.memory_space<vmem>>) attributes {dimension_semantics = [], scalar_prefetch = 0 : i64, scratch_operands = 0 : i64, tpu.core_type = #tpu.core_type<tc>} {
    %c0 = arith.constant 0 : index
    %c0_0 = arith.constant 0 : index
    %0 = vector.load %arg0[%c0, %c0_0] : memref<32x1xi32, #tpu.memory_space<vmem>>, vector<32x1xi32>
    %1 = tpu.iota {dimensions = array<i32: 1>} : vector<32x64xi32>
    %2 = vector.broadcast %0 : vector<32x1xi32> to vector<32x64xi32>
    %3 = arith.cmpi eq, %1, %2 : vector<32x64xi32>
    %4 = arith.extui %3 : vector<32x64xi1> to vector<32x64xi32>
    %5 = arith.sitofp %4 : vector<32x64xi32> to vector<32x64xf32>
    %6 = tpu.iota {dimensions = array<i32: 0>} : vector<32x1xi32>
    %c16_i32 = arith.constant 16 : i32
    %c0_i32 = arith.constant 0 : i32
    %7 = arith.cmpi eq, %c16_i32, %c0_i32 : i32
    %c1_i32 = arith.constant 1 : i32
    %8 = arith.select %7, %c1_i32, %c16_i32 : i32
    %9 = vector.broadcast %8 : i32 to vector<32x1xi32>
    %10 = arith.remsi %6, %9 : vector<32x1xi32>
    %c0_i32_1 = arith.constant 0 : i32
    %11 = vector.broadcast %c0_i32_1 : i32 to vector<32x1xi32>
    %12 = arith.cmpi ne, %10, %11 : vector<32x1xi32>
    %c0_i32_2 = arith.constant 0 : i32
    %13 = vector.broadcast %c0_i32_2 : i32 to vector<32x1xi32>
    %14 = arith.cmpi slt, %10, %13 : vector<32x1xi32>
    %c0_i32_3 = arith.constant 0 : i32
    %15 = arith.cmpi slt, %8, %c0_i32_3 : i32
    %16 = vector.broadcast %15 : i1 to vector<32x1xi1>
    %17 = vector.broadcast %16 : vector<32x1xi1> to vector<32x1xi1>
    %18 = arith.xori %14, %17 : vector<32x1xi1>
    %19 = arith.andi %18, %12 : vector<32x1xi1>
    %20 = vector.broadcast %8 : i32 to vector<32x1xi32>
    %21 = arith.addi %10, %20 : vector<32x1xi32>
    %22 = arith.select %19, %21, %10 : vector<32x1xi1>, vector<32x1xi32>
    %c1_i32_4 = arith.constant 1 : i32
    %23 = tpu.dynamic_rotate %5 by %c1_i32_4 dim 0 : vector<32x64xf32>, i32 -> vector<32x64xf32>
    %c-1_i32 = arith.constant -1 : i32
    %24 = vector.broadcast %c-1_i32 : i32 to vector<32x1xi32>
    %25 = arith.addi %22, %24 : vector<32x1xi32>
    %c0_i32_5 = arith.constant 0 : i32
    %26 = vector.broadcast %c0_i32_5 : i32 to vector<32x1xi32>
    %27 = arith.cmpi sge, %25, %26 : vector<32x1xi32>
    %c-1_i32_6 = arith.constant -1 : i32
    %28 = vector.broadcast %c-1_i32_6 : i32 to vector<32x1xi32>
    %29 = arith.addi %22, %28 : vector<32x1xi32>
    %c16_i32_7 = arith.constant 16 : i32
    %30 = vector.broadcast %c16_i32_7 : i32 to vector<32x1xi32>
    %31 = arith.cmpi slt, %29, %30 : vector<32x1xi32>
    %32 = arith.andi %27, %31 : vector<32x1xi1>
    %cst = arith.constant 0.000000e+00 : f32
    %33 = vector.shape_cast %32 : vector<32x1xi1> to vector<32x1xi1>
    %34 = vector.broadcast %33 : vector<32x1xi1> to vector<32x64xi1>
    %35 = vector.broadcast %cst : f32 to vector<32x64xf32>
    %36 = arith.select %34, %23, %35 : vector<32x64xi1>, vector<32x64xf32>
    %c0_8 = arith.constant 0 : index
    %c0_9 = arith.constant 0 : index
    %37 = vector.load %arg1[%c0_8, %c0_9] : memref<240x32xf32, #tpu.memory_space<vmem>>, vector<64x32xf32>
    %cst_10 = arith.constant dense<0.000000e+00> : vector<32x32xf32>
    %38 = tpu.matmul %36, %37, %cst_10 {dimension_numbers = #tpu.dot_dimension_numbers<[1], [0], [0], [1], [0, 0, 1, 1], [], []>} : vector<32x64xf32>, vector<64x32xf32>, vector<32x32xf32> -> vector<32x32xf32>
    %c64 = arith.constant 64 : index
    %c0_11 = arith.constant 0 : index
    %39 = vector.load %arg1[%c64, %c0_11] : memref<240x32xf32, #tpu.memory_space<vmem>>, vector<64x32xf32>
    %cst_12 = arith.constant dense<0.000000e+00> : vector<32x32xf32>
    %40 = tpu.matmul %5, %39, %cst_12 {dimension_numbers = #tpu.dot_dimension_numbers<[1], [0], [0], [1], [0, 0, 1, 1], [], []>} : vector<32x64xf32>, vector<64x32xf32>, vector<32x32xf32> -> vector<32x32xf32>
    %41 = arith.addf %38, %40 : vector<32x32xf32>
    %c31_i32 = arith.constant 31 : i32
    %42 = tpu.dynamic_rotate %5 by %c31_i32 dim 0 : vector<32x64xf32>, i32 -> vector<32x64xf32>
    %c1_i32_13 = arith.constant 1 : i32
    %43 = vector.broadcast %c1_i32_13 : i32 to vector<32x1xi32>
    %44 = arith.addi %22, %43 : vector<32x1xi32>
    %c0_i32_14 = arith.constant 0 : i32
    %45 = vector.broadcast %c0_i32_14 : i32 to vector<32x1xi32>
    %46 = arith.cmpi sge, %44, %45 : vector<32x1xi32>
    %c1_i32_15 = arith.constant 1 : i32
    %47 = vector.broadcast %c1_i32_15 : i32 to vector<32x1xi32>
    %48 = arith.addi %22, %47 : vector<32x1xi32>
    %c16_i32_16 = arith.constant 16 : i32
    %49 = vector.broadcast %c16_i32_16 : i32 to vector<32x1xi32>
    %50 = arith.cmpi slt, %48, %49 : vector<32x1xi32>
    %51 = arith.andi %46, %50 : vector<32x1xi1>
    %cst_17 = arith.constant 0.000000e+00 : f32
    %52 = vector.shape_cast %51 : vector<32x1xi1> to vector<32x1xi1>
    %53 = vector.broadcast %52 : vector<32x1xi1> to vector<32x64xi1>
    %54 = vector.broadcast %cst_17 : f32 to vector<32x64xf32>
    %55 = arith.select %53, %42, %54 : vector<32x64xi1>, vector<32x64xf32>
    %c128 = arith.constant 128 : index
    %c0_18 = arith.constant 0 : index
    %56 = vector.load %arg1[%c128, %c0_18] : memref<240x32xf32, #tpu.memory_space<vmem>>, vector<64x32xf32>
    %cst_19 = arith.constant dense<0.000000e+00> : vector<32x32xf32>
    %57 = tpu.matmul %55, %56, %cst_19 {dimension_numbers = #tpu.dot_dimension_numbers<[1], [0], [0], [1], [0, 0, 1, 1], [], []>} : vector<32x64xf32>, vector<64x32xf32>, vector<32x32xf32> -> vector<32x32xf32>
    %58 = arith.addf %41, %57 : vector<32x32xf32>
    %c192 = arith.constant 192 : index
    %c0_20 = arith.constant 0 : index
    %59 = vector.load %arg1[%c192, %c0_20] : memref<240x32xf32, #tpu.memory_space<vmem>>, vector<1x32xf32>
    %60 = vector.broadcast %59 : vector<1x32xf32> to vector<32x32xf32>
    %61 = arith.addf %58, %60 : vector<32x32xf32>
    %cst_21 = arith.constant 0.000000e+00 : f32
    %62 = vector.broadcast %cst_21 : f32 to vector<32x32xf32>
    %63 = arith.maximumf %61, %62 : vector<32x32xf32>
    %c200 = arith.constant 200 : index
    %c0_22 = arith.constant 0 : index
    %64 = vector.load %arg1[%c200, %c0_22] : memref<240x32xf32, #tpu.memory_space<vmem>>, vector<32x32xf32>
    %cst_23 = arith.constant dense<0.000000e+00> : vector<32x32xf32>
    %65 = tpu.matmul %63, %64, %cst_23 {dimension_numbers = #tpu.dot_dimension_numbers<[1], [0], [0], [1], [0, 0, 1, 1], [], []>} : vector<32x32xf32>, vector<32x32xf32>, vector<32x32xf32> -> vector<32x32xf32>
    %66 = vector.extract_strided_slice %65 {offsets = [0, 0], sizes = [32, 8], strides = [1, 1]} : vector<32x32xf32> to vector<32x8xf32>
    %67 = vector.extract_strided_slice %65 {offsets = [0, 8], sizes = [32, 8], strides = [1, 1]} : vector<32x32xf32> to vector<32x8xf32>
    %c0_i32_24 = arith.constant 0 : i32
    %68 = vector.broadcast %c0_i32_24 : i32 to vector<32x1xi32>
    %69 = arith.cmpi ne, %0, %68 : vector<32x1xi32>
    %cst_25 = arith.constant -1.000000e+30 : f32
    %70 = vector.shape_cast %69 : vector<32x1xi1> to vector<32x1xi1>
    %71 = vector.broadcast %70 : vector<32x1xi1> to vector<32x8xi1>
    %72 = vector.broadcast %cst_25 : f32 to vector<32x8xf32>
    %73 = arith.select %71, %66, %72 : vector<32x8xi1>, vector<32x8xf32>
    %74 = vector.extract_strided_slice %73 {offsets = [0, 0], sizes = [16, 8], strides = [1, 1]} : vector<32x8xf32> to vector<16x8xf32>
    %75 = vector.extract_strided_slice %67 {offsets = [0, 0], sizes = [16, 8], strides = [1, 1]} : vector<32x8xf32> to vector<16x8xf32>
    %cst_26 = arith.constant dense<0xFF800000> : vector<8xf32>
    %76 = vector.multi_reduction <maximumf>, %74, %cst_26 [0] : vector<16x8xf32> to vector<8xf32>
    %77 = vector.shape_cast %76 : vector<8xf32> to vector<1x8xf32>
    %78 = vector.broadcast %77 : vector<1x8xf32> to vector<16x8xf32>
    %79 = arith.subf %74, %78 : vector<16x8xf32>
    %80 = math.exp %79 : vector<16x8xf32>
    %81 = arith.mulf %80, %75 : vector<16x8xf32>
    %cst_27 = arith.constant dense<0.000000e+00> : vector<8xf32>
    %82 = vector.multi_reduction <add>, %81, %cst_27 [0] : vector<16x8xf32> to vector<8xf32>
    %83 = vector.shape_cast %82 : vector<8xf32> to vector<1x8xf32>
    %cst_28 = arith.constant dense<0.000000e+00> : vector<8xf32>
    %84 = vector.multi_reduction <add>, %80, %cst_28 [0] : vector<16x8xf32> to vector<8xf32>
    %85 = vector.shape_cast %84 : vector<8xf32> to vector<1x8xf32>
    %86 = vector.extract_strided_slice %73 {offsets = [16, 0], sizes = [16, 8], strides = [1, 1]} : vector<32x8xf32> to vector<16x8xf32>
    %87 = vector.extract_strided_slice %67 {offsets = [16, 0], sizes = [16, 8], strides = [1, 1]} : vector<32x8xf32> to vector<16x8xf32>
    %cst_29 = arith.constant dense<0xFF800000> : vector<8xf32>
    %88 = vector.multi_reduction <maximumf>, %86, %cst_29 [0] : vector<16x8xf32> to vector<8xf32>
    %89 = vector.shape_cast %88 : vector<8xf32> to vector<1x8xf32>
    %90 = vector.broadcast %89 : vector<1x8xf32> to vector<16x8xf32>
    %91 = arith.subf %86, %90 : vector<16x8xf32>
    %92 = math.exp %91 : vector<16x8xf32>
    %93 = arith.mulf %92, %87 : vector<16x8xf32>
    %cst_30 = arith.constant dense<0.000000e+00> : vector<8xf32>
    %94 = vector.multi_reduction <add>, %93, %cst_30 [0] : vector<16x8xf32> to vector<8xf32>
    %95 = vector.shape_cast %94 : vector<8xf32> to vector<1x8xf32>
    %cst_31 = arith.constant dense<0.000000e+00> : vector<8xf32>
    %96 = vector.multi_reduction <add>, %92, %cst_31 [0] : vector<16x8xf32> to vector<8xf32>
    %97 = vector.shape_cast %96 : vector<8xf32> to vector<1x8xf32>
    %98 = tpu.concatenate %83, %95 in 1 : vector<1x8xf32>, vector<1x8xf32> -> vector<1x16xf32>
    %99 = tpu.concatenate %85, %97 in 1 : vector<1x8xf32>, vector<1x8xf32> -> vector<1x16xf32>
    %100 = tpu.reciprocal %99 {approx = true} : vector<1x16xf32> -> vector<1x16xf32>
    %101 = arith.mulf %99, %100 : vector<1x16xf32>
    %cst_32 = arith.constant 2.000000e+00 : f32
    %102 = vector.broadcast %cst_32 : f32 to vector<1x16xf32>
    %103 = arith.subf %102, %101 : vector<1x16xf32>
    %104 = arith.mulf %100, %103 : vector<1x16xf32>
    %c232 = arith.constant 232 : index
    %c0_33 = arith.constant 0 : index
    %105 = vector.load %arg1[%c232, %c0_33] : memref<240x32xf32, #tpu.memory_space<vmem>>, vector<1x16xf32>
    %106 = arith.mulf %98, %104 : vector<1x16xf32>
    %107 = arith.addf %106, %105 : vector<1x16xf32>
    %c0_34 = arith.constant 0 : index
    %c0_35 = arith.constant 0 : index
    %108 = vector.load %arg2[%c0_34, %c0_35] : memref<1x16xf32, #tpu.memory_space<vmem>>, vector<1x16xf32>
    tpu.vector_store %arg2[%c0_34, %c0_35], %107 {strides = array<i32>} : memref<1x16xf32, #tpu.memory_space<vmem>>, vector<1x16xf32>,
    return
  }
}

</mosaic_0001>

<bundles_post_ra>
// kernel: tpu_custom_call.1
= control target key start
LH: loop header
LB: loop body
LE: loop exit
PB: predicated region body
PF: predicated region fallthrough
CT: control target
= control target key end

     0   :  { %v1002_v2 = vmov 0   ;;  %s1213_s0 = inlined_call_operand.vmem [shape: s32[32,1], index: 0, kind: input, shape index: {}]   ;;  %s1214_s1 = inlined_call_operand.vmem [shape: f32[240,32], index: 1, kind: input, shape index: {}]   ;;  %s1215_s2 = inlined_call_operand.hbm [shape: f32[1,16], index: 2, kind: output, shape index: {}]  }
   0x1   :  { %v1025_v0 = vld [vmem:[%s1213_s0 + $0x8] sm:$0xff]  ;;  %v1030_v1 = vld [vmem:[%s1213_s0] sm:$0xff]  ;;  %967 = vset.pattern.permute.xlu1 %v1002_v2  ;;  %966 = vset.pattern.permute.xlu0 %v1002_v2  ;;  %v14_v3 = vld [vmem:[%s1213_s0 + $0x10] sm:$0xff] }
   0x2   :  { %v140_v4 = vld [vmem:[%s1214_s1 + $0x40] sm:$0xff]  ;;  %v141_v5 = vld [vmem:[%s1214_s1 + $0x48] sm:$0xff]  ;;  %22 = vperm.xlu1 %967, %v1025_v0   ;;  %19 = vperm.xlu0 %966, %v1030_v1   ;;  %v142_v7 = vld [vmem:[%s1214_s1 + $0x50] sm:$0xff]  ;;  %vm606_vm1 = vcmp.ne.s32.totalorder %v14_v3, 0 }
   0x3   :  { %v897_v6 = vpack.c.bf16 %v141_v5, %v140_v4  ;;  %v143_v8 = vld [vmem:[%s1214_s1 + $0x58] sm:$0xff]  ;;  %v132_v9 = vld [vmem:[%s1214_s1] sm:$0xff]  ;;  %v133_v12 = vld [vmem:[%s1214_s1 + $0x8] sm:$0xff] }
   0x4   :  { %v15_v10 = vld [vmem:[%s1213_s0 + $0x18] sm:$0xff]  ;;  %v901_v11 = vpack.c.bf16 %v143_v8, %v142_v7  ;;  %v144_v13 = vld [vmem:[%s1214_s1 + $0x60] sm:$0xff]  ;;  %v913_v14 = vpack.c.bf16 %v133_v12, %v132_v9  ;;  %v145_v15 = vld [vmem:[%s1214_s1 + $0x68] sm:$0xff] }
   0x5   :  { %vm607_vm0 = vcmp.ne.s32.totalorder %v15_v10, 0  ;;  %898 = vmatprep.subr.bf16.mxu1 %v897_v6  ;;  %v134_v16 = vld [vmem:[%s1214_s1 + $0x10] sm:$0xff]  ;;  %v135_v17 = vld [vmem:[%s1214_s1 + $0x18] sm:$0xff]  ;;  %v136_v19 = vld [vmem:[%s1214_s1 + $0x20] sm:$0xff] }
   0x6   :  { %900 = vmatpush3.bf16.msra.mxu1 %v897_v6  ;;  %v917_v18 = vpack.c.bf16 %v135_v17, %v134_v16  ;;  %25 = vperm.xlu1 %967, %v14_v3   ;;  %v137_v20 = vld [vmem:[%s1214_s1 + $0x28] sm:$0xff] }
   0x7   :  { %28 = vperm.xlu0 %966, %v15_v10  }
   0x8   :  { %7 = vsyncpa [#allocation3], 0  ;;  %v611_v21 = vsel %vm607_vm0, 1, %v1002_v2  ;;  %v610_v22 = vsel %vm606_vm1, 1, %v1002_v2  ;;  %902 = vmatprep.subr.bf16.mxu1 %v901_v11  ;;  %914 = vmatprep.subr.bf16.mxu0 %v913_v14  ;;  %v905_v23 = vpack.c.bf16 %v145_v15, %v144_v13  ;;  %v146_v24 = vld [vmem:[%s1214_s1 + $0x70] sm:$0xff]  ;;  %v147_v25 = vld [vmem:[%s1214_s1 + $0x78] sm:$0xff]  ;;  %v921_v26 = vpack.c.bf16 %v137_v20, %v136_v19 }
   0x9   :  { %916 = vmatpush3.bf16.msra.mxu0 %v913_v14  ;;  %v909_v27 = vpack.c.bf16 %v147_v25, %v146_v24  ;;  %v138_v28 = vld [vmem:[%s1214_s1 + $0x30] sm:$0xff]  ;;  %v139_v29 = vld [vmem:[%s1214_s1 + $0x38] sm:$0xff]  ;;  %v380_v31 = vld [vmem:[%s1214_s1 + $0x80] sm:$0xff]  ;;  %v16_v34 = vlaneseq  ;;  %vm148_vm2 = vcmask 523264   ;;  %v1003_v42 = vmov 0.0   ;;  %s1004_s17 = smov 120  }
   0xa   :  { %904 = vmatpush3.bf16.msra.mxu1 %v901_v11  ;;  %918 = vmatprep.subr.bf16.mxu0 %v917_v18  ;;  %v925_v30 = vpack.c.bf16 %v139_v29, %v138_v28  ;;  %v381_v32 = vld [vmem:[%s1214_s1 + $0x88] sm:$0xff]  ;;  %v382_v55 = vld [vmem:[%s1214_s1 + $0x90] sm:$0xff]  ;;  %v383_v56 = vld [vmem:[%s1214_s1 + $0x98] sm:$0xff]  ;;  %vm506_vm13 = vcmask 261120   ;;  %vm605_vm14 = vcmp.ne.s32.totalorder %v1025_v0, 0  ;;  %vm632_vm15 = vcmask 64512  }
   0xb   :  { %622 = vperm.xlu1 %967, %v611_v21   ;;  %619 = vperm.xlu0 %966, %v610_v22   ;;  %v929_v33 = vpack.c.bf16 %v381_v32, %v380_v31  ;;  %v1098_v35 = vshrl.u32 %v16_v34, 7  ;;  %v17_v37 = vand.u32 127, %v16_v34  ;;  %v933_v61 = vpack.c.bf16 %v383_v56, %v382_v55  ;;  %v384_v63 = vld [vmem:[%s1214_s1 + $0xa0] sm:$0xff]  ;;  %v385_v3 = vld [vmem:[%s1214_s1 + $0xa8] sm:$0xff]  ;;  %v386_v9 = vld [vmem:[%s1214_s1 + $0xb0] sm:$0xff]  ;;  %s1005_s18 = smov 8  }
   0xc   :  { %906 = vmatprep.subr.bf16.mxu1 %v905_v23  ;;  %v937_v7 = vpack.c.bf16 %v385_v3, %v384_v63  ;;  %v387_v10 = vld [vmem:[%s1214_s1 + $0xb8] sm:$0xff]  ;;  %v502_v25 = vld [vmem:[%s1214_s1 + $0xc8] sm:$0xff]  ;;  %v505_v29 = vld [vmem:[%s1214_s1 + $0xe0] sm:$0xff]  ;;  %vm604_vm0 = vcmp.ne.s32.totalorder %v1030_v1, 0  ;;  %s1006_s21 = smov [#allocation2]  }
   0xd   :  { %920 = vmatpush3.bf16.msra.mxu0 %v917_v18  ;;  %v45_v36 = vadd.s32 16, %v1098_v35  ;;  %v51_v38 = vand.u32 15, %v1098_v35  ;;  %vm99_vm9 = vcmp.lt.s32.totalorder %v1098_v35, 1  ;;  %v44_v6 = vadd.s32 8, %v1098_v35  ;;  %v504_v28 = vld [vmem:[%s1214_s1 + $0xd8] sm:$0xff]  ;;  %s744_s22 = sshll.u32 %s1006_s21, 4  ;;  %s745_s22 = int_to_ptr.vmem [resolvable:$true] %s744_s22 }
   0xe   :  { %908 = vmatpush3.bf16.msra.mxu1 %v905_v23  ;;  %922 = vmatprep.subr.bf16.mxu0 %v921_v26  ;;  %vm347_vm10 = vcmp.lt.s32.totalorder %v1098_v35, 7  ;;  %v46_v13 = vadd.s32 24, %v1098_v35  ;;  %v941_v14 = vpack.c.bf16 %v387_v10, %v386_v9  ;;  %v608_v0 = vsel %vm604_vm0, 1, %v1002_v2  ;;  %s978_s23 = scalar_lea.vmem %s745_s22, 16  ;;  %s982_s24 = scalar_lea.vmem %s745_s22, 32 }
   0xf   :  { %910 = vmatprep.subr.bf16.mxu1 %v909_v27  ;;  %v65_v39 = vand.u32 15, %v45_v36  ;;  %v104_v45 = vadd.s32 4294967295, %v51_v38  ;;  %v58_v12 = vand.u32 15, %v44_v6  ;;  %v768_v36 = vld [vmem:[%s1214_s1 + $0xc0] ss:$0 sm:$0xff]  ;;  %p979_p0 = scmp.ne.s32.totalorder %s745_s22, %s978_s23  ;;  %p983_p1 = scmp.lt.s32.totalorder %s745_s22, %s745_s22 }
  0x10   :  { %v72_v16 = vand.u32 15, %v46_v13  ;;  %p984_p2 = scmp.lt.s32.totalorder %s982_s24, %s978_s23 }
  0x11   :  { %924 = vmatpush3.bf16.msra.mxu0 %v921_v26  ;;  %v106_v46 = vadd.s32 4294967295, %v65_v39  ;;  %vm108_vm7 = vcmp.ge.s32.totalorder %v104_v45, 0  ;;  %v353_v15 = vadd.s32 1, %v58_v12  ;;  %v503_v26 = vld [vmem:[%s1214_s1 + $0xd0] sm:$0xff] }
  0x12   :  { %912 = vmatpush3.bf16.msra.mxu1 %v909_v27  ;;  %926 = vmatprep.subr.bf16.mxu0 %v925_v30  ;;  %v355_v20 = vadd.s32 1, %v72_v16  ;;  %v945_v27 = vpack.c.bf16 %v503_v26, %v502_v25  ;;  %p985_p3 = por %p984_p2, %p983_p1 }
  0x13   :  { %vm110_vm8 = vcmp.ge.s32.totalorder %v106_v46, 0  ;;  %vm361_vm11 = vcmp.lt.s32.totalorder %v353_v15, 16 }
  0x14   :  { %vm363_vm12 = vcmp.lt.s32.totalorder %v355_v20, 16  ;;  %946 = vmatprep.subr.bf16.mxu1 %v945_v27  ;;  %p986_p4 = pnand %p985_p3, %p979_p0 }
  0x15   :  { %928 = vmatpush3.bf16.msra.mxu0 %v925_v30  ;;  %v949_v30 = vpack.c.bf16 %v505_v29, %v504_v28 }
  0x16   :  { %930 = vmatprep.subr.bf16.mxu0 %v929_v33 }
  0x81   :  { %v23_v40 = vpop.permute.xlu1 %22  ;;  %v20_v41 = vpop.permute.xlu0 %19 }
  0x82   :  { %vm31_vm3 = vcmp.eq.s32.totalorder %v17_v37, %v23_v40  ;;  %vm30_vm4 = vcmp.eq.s32.totalorder %v17_v37, %v20_v41 }
  0x83   :  { %v753_v43 = vsel %vm31_vm3, 1.0, %v1003_v42  ;;  %v1102_v44 = vsel %vm30_vm4, 1.0, %v1003_v42 }
  0x84   :  { %833 = vmatprep.mubr.msk.f32.mxu1 %vm148_vm2, %v1102_v44  ;;  %v96_v51 = vrot.slane %v753_v43, 7  ;;  %v95_v52 = vrot.slane %v1102_v44, 7  ;;  %v344_v4 = vrot.slane %v753_v43, 1  ;;  %v343_v5 = vrot.slane %v1102_v44, 1 }
  0x85   :  { %v26_v47 = vpop.permute.xlu1 %25  ;;  %834 = vmatmul.mubr.msk.f32.vlgmr.msra.gmra.mrb[0].mxu1 %vm148_vm2, %v753_v43 }
  0x86   :  { %v29_v48 = vpop.permute.xlu0 %28  ;;  %vm32_vm5 = vcmp.eq.s32.totalorder %v17_v37, %v26_v47  ;;  %v102_v62 = vsel %vm99_vm9, %v95_v52, %v96_v51  ;;  %v350_v11 = vsel %vm347_vm10, %v343_v5, %v344_v4  ;;  %948 = vmatpush3.bf16.msra.mxu1 %v945_v27 }
  0x87   :  { %vm33_vm6 = vcmp.eq.s32.totalorder %v17_v37, %v29_v48  ;;  %v754_v49 = vsel %vm32_vm5, 1.0, %v1003_v42  ;;  %950 = vmatprep.subr.bf16.mxu1 %v949_v30  ;;  %vm736_vm5 = vcmask 122880  }
  0x88   :  { %v755_v50 = vsel %vm33_vm6, 1.0, %v1003_v42  ;;  %v97_v53 = vrot.slane %v754_v49, 7  ;;  %836 = vmatprep.mubr.msk.f32.mxu1 %vm148_vm2, %v754_v49  ;;  %v345_v17 = vrot.slane %v754_v49, 1 }
  0x89   :  { %v98_v54 = vrot.slane %v755_v50, 7  ;;  %837 = vmatmul.mubr.msk.f32.gmra.mrb[2].mxu1 %vm148_vm2, %v755_v50  ;;  %v346_v18 = vrot.slane %v755_v50, 1 }
  0x8a   :  { %v101_v58 = vsel %vm99_vm9, %v96_v51, %v97_v53  ;;  %v349_v19 = vsel %vm347_vm10, %v344_v4, %v345_v17  ;;  %952 = vmatpush3.bf16.msra.mxu1 %v949_v30  ;;  %v620_v55 = vpop.permute.xlu0 %619 }
  0x8b   :  { %v103_v57 = vsel %vm99_vm9, %v98_v54, %v95_v52  ;;  %v130_v60 = vsel %vm110_vm8, %v101_v58, 0.0  ;;  %v100_v8 = vsel %vm99_vm9, %v97_v53, %v98_v54  ;;  %v377_v21 = vsel %vm361_vm11, %v349_v19, 0.0  ;;  %v623_v53 = vpop.permute.xlu1 %622 }
  0x8c   :  { %v128_v59 = vsel %vm108_vm7, %v103_v57, 0.0  ;;  %v348_v22 = vsel %vm347_vm10, %v345_v17, %v346_v18  ;;  %v351_v23 = vsel %vm347_vm10, %v346_v18, %v343_v5  ;;  %vm627_vm1 = vcmp.eq.s32.totalorder %v623_v53, 1 }
  0x8d   :  { %855 = vmatprep.mubr.msk.f32.mxu0 %vm148_vm2, %v128_v59  ;;  %v379_v24 = vsel %vm363_vm12, %v351_v23, 0.0 }
  0x8e   :  { %856 = vmatmul.mubr.msk.f32.vlgmr.msra.gmra.mrb[0].mxu0 %vm148_vm2, %v102_v62 }
  0x8f   :  { %932 = vmatpush3.bf16.msra.mxu0 %v929_v33  ;;  %858 = vmatprep.mubr.msk.f32.mxu0 %vm148_vm2, %v130_v60 }
  0x90   :  { %934 = vmatprep.subr.bf16.mxu0 %v933_v61 }
  0x92   :  { %859 = vmatmul.mubr.msk.f32.gmra.mrb[2].mxu0 %vm148_vm2, %v100_v8 }
  0x93   :  { %936 = vmatpush3.bf16.msra.mxu0 %v933_v61  ;;  %877 = vmatprep.mubr.msk.f32.mxu0 %vm148_vm2, %v350_v11  ;;  %v609_v61 = vsel %vm605_vm14, 1, %v1002_v2 }
  0x94   :  { %938 = vmatprep.subr.bf16.mxu0 %v937_v7 }
  0x97   :  { %940 = vmatpush3.bf16.msra.mxu0 %v937_v7 }
  0x98   :  { %942 = vmatprep.subr.bf16.mxu0 %v941_v14 }
  0x9b   :  { %944 = vmatpush3.bf16.msra.mxu0 %v941_v14 }
  0x9e   :  { %878 = vmatmul.mubr.msk.f32.vlgmr.msra.gmra.mrb[0].mxu0 %vm148_vm2, %v377_v21 }
  0x9f   :  { %880 = vmatprep.mubr.msk.f32.mxu0 %vm148_vm2, %v348_v22 }
  0xa2   :  { %881 = vmatmul.mubr.msk.f32.gmra.mrb[2].mxu0 %vm148_vm2, %v379_v24  ;;  %vm626_vm2 = vcmp.eq.s32.totalorder %v620_v55, 1 }
 0x158   :  { %v835_v31 = vpop.f32.mrb[0].mxu1 }
 0x159   :  { %v227_v32 = vpop.f32.mrb[1].mxu1 }
 0x15c   :  { %v838_v33 = vpop.f32.mrb[2].mxu1 }
 0x15d   :  { %v237_v34 = vpop.f32.mrb[3].mxu1 }
 0x171   :  { %v879_v35 = vpop.f32.mrb[0].mxu0 }
 0x172   :  { %v953_v37 = vadd.f32 %v879_v35, %v835_v31  ;;  %v466_v38 = vpop.f32.mrb[1].mxu0 }
 0x173   :  { %v954_v39 = vadd.f32 %v466_v38, %v227_v32 }
 0x174   :  { %v495_v40 = vadd.f32 %v953_v37, %v768_v36 }
 0x175   :  { %v494_v41 = vadd.f32 %v954_v39, %v768_v36  ;;  %v882_v42 = vpop.f32.mrb[2].mxu0 }
 0x176   :  { %v955_v43 = vadd.f32 %v882_v42, %v838_v33  ;;  %v476_v44 = vpop.f32.mrb[3].mxu0  ;;  %v499_v47 = vmax.f32 %v495_v40, 0.0 }
 0x177   :  { %v498_v45 = vmax.f32 %v494_v41, 0.0  ;;  %v956_v46 = vadd.f32 %v476_v44, %v237_v34 }
 0x178   :  { %v497_v48 = vadd.f32 %v955_v43, %v768_v36 }
 0x179   :  { %v496_v49 = vadd.f32 %v956_v46, %v768_v36  ;;  %891 = vmatprep.mubr.msk.f32.mxu1 %vm506_vm13, %v498_v45 }
 0x17a   :  { %892 = vmatmul.mubr.msk.f32.vlgmr.msra.gmra.mrb[4].mxu1 %vm506_vm13, %v499_v47  ;;  %v501_v51 = vmax.f32 %v497_v48, 0.0 }
 0x17b   :  { %v500_v50 = vmax.f32 %v496_v49, 0.0 }
 0x17d   :  { %894 = vmatprep.mubr.msk.f32.mxu1 %vm506_vm13, %v500_v50 }
 0x17e   :  { %895 = vmatmul.mubr.msk.f32.gmra.mrb[6].mxu1 %vm506_vm13, %v501_v51 }
 0x24d   :  { %v1172_v52 = vpop.f32.mrb[4].mxu1 }
 0x24e   :  { %v1174_v54 = vpop.f32.mrb[5].mxu1 }
 0x251   :  { %v896_v56 = vpop.f32.mrb[6].mxu1 }
 0x252   :  { %v631_v57 = vsel %vm627_vm1, %v896_v56, -1e+30  ;;  %695 = vrot.lane.b32.xlu1 %v896_v56, %s1004_s17  ;;  %v595_v58 = vpop.f32.mrb[7].mxu1 }
 0x253   :  { %v677_v59 = vsel %vm632_vm15, %v631_v57, -inf  ;;  %v630_v60 = vsel %vm626_vm2, %v595_v58, -1e+30  ;;  %693 = vrot.lane.b32.xlu0 %v595_v58, %s1004_s17 }
 0x254   :  { %v676_v62 = vsel %vm632_vm15, %v630_v60, -inf }
 0x255   :  { %v678_v63 = vmax.f32 %v676_v62, %v677_v59 }
 0x256   :  { %616 = vperm.xlu1 %967, %v609_v61  }
 0x257   :  { %v679_v1 = vrot.slane %v678_v63, 4  ;;  %613 = vperm.xlu0 %966, %v608_v0  }
 0x259   :  { %v680_v3 = vmax.f32 %v678_v63, %v679_v1 }
 0x25a   :  { %652 = vrot.lane.b32.xlu1 %v1172_v52, %s1004_s17 }
 0x25b   :  { %v681_v4 = vrot.slane %v680_v3, 2  ;;  %650 = vrot.lane.b32.xlu0 %v1174_v54, %s1004_s17 }
 0x25d   :  { %v682_v5 = vmax.f32 %v680_v3, %v681_v4 }
 0x25f   :  { %v683_v6 = vrot.slane %v682_v5, 1 }
 0x261   :  { %v684_v7 = vmax.f32 %v682_v5, %v683_v6 }
 0x263   :  { %v685_v8 = vsub.f32 %v630_v60, %v684_v7  ;;  %v686_v9 = vsub.f32 %v631_v57, %v684_v7 }
 0x265   :  { %v687_v10 = vmul.f32 1.442695, %v685_v8  ;;  %v689_v11 = vmul.f32 1.442695, %v686_v9 }
 0x267   :  { %968 = vpow2.f32 %v687_v10 }
 0x268   :  { %970 = vpow2.f32 %v689_v11 }
 0x271   :  { %v969_v2 = vpop.eup %968 }
 0x272   :  { %v971_v12 = vpop.eup %970  ;;  %v710_v13 = vsel %vm632_vm15, %v969_v2, 0.0 }
 0x273   :  { %v711_v14 = vsel %vm632_vm15, %v971_v12, 0.0 }
 0x274   :  { %v712_v15 = vadd.f32 %v711_v14, %v710_v13 }
 0x276   :  { %v713_v16 = vrot.slane %v712_v15, 4 }
 0x278   :  { %v714_v17 = vadd.f32 %v713_v16, %v712_v15 }
 0x27a   :  { %v715_v18 = vrot.slane %v714_v17, 2 }
 0x27c   :  { %v716_v19 = vadd.f32 %v715_v18, %v714_v17 }
 0x27e   :  { %v717_v20 = vrot.slane %v716_v19, 1 }
 0x280   :  { %v718_v21 = vadd.f32 %v717_v20, %v716_v19  ;;  %v733_v20 = vld [vmem:[%s1214_s1 + $0xe8] sm:$0x1] }
 0x282   :  { %725 = vrot.lane.b32.xlu0 %v718_v21, %s1005_s18 }
 0x2c4   :  { %v696_v22 = vpop.permute.xlu1 %695 }
 0x2c5   :  { %v700_v23 = vmul.f32 %v971_v12, %v696_v22  ;;  %v694_v24 = vpop.permute.xlu0 %693 }
 0x2c6   :  { %v699_v25 = vmul.f32 %v969_v2, %v694_v24 }
 0x2c7   :  { %v702_v26 = vsel %vm632_vm15, %v700_v23, 0.0 }
 0x2c8   :  { %v701_v27 = vsel %vm632_vm15, %v699_v25, 0.0 }
 0x2c9   :  { %v703_v28 = vadd.f32 %v702_v26, %v701_v27 }
 0x2cb   :  { %v704_v29 = vrot.slane %v703_v28, 4 }
 0x2cd   :  { %v705_v30 = vadd.f32 %v704_v29, %v703_v28 }
 0x2cf   :  { %v706_v31 = vrot.slane %v705_v30, 2 }
 0x2d1   :  { %v707_v32 = vadd.f32 %v706_v31, %v705_v30 }
 0x2d3   :  { %v708_v33 = vrot.slane %v707_v32, 1 }
 0x2d5   :  { %v617_v34 = vpop.permute.xlu1 %616  ;;  %v709_v35 = vadd.f32 %v708_v33, %v707_v32 }
 0x2d6   :  { %vm625_vm3 = vcmp.eq.s32.totalorder %v617_v34, 1  ;;  %v614_v36 = vpop.permute.xlu0 %613 }
 0x2d7   :  { %v629_v37 = vsel %vm625_vm3, %v1172_v52, -1e+30  ;;  %vm624_vm4 = vcmp.eq.s32.totalorder %v614_v36, 1  ;;  %720 = vrot.lane.b32.xlu1 %v709_v35, %s1005_s18 }
 0x2d8   :  { %v634_v38 = vsel %vm632_vm15, %v629_v37, -inf  ;;  %v628_v39 = vsel %vm624_vm4, %v1174_v54, -1e+30 }
 0x2d9   :  { %v633_v40 = vsel %vm632_vm15, %v628_v39, -inf  ;;  %v653_v56 = vpop.permute.xlu1 %652 }
 0x2da   :  { %v635_v41 = vmax.f32 %v633_v40, %v634_v38  ;;  %v651_v53 = vpop.permute.xlu0 %650 }
 0x2dc   :  { %v636_v42 = vrot.slane %v635_v41, 4 }
 0x2de   :  { %v637_v43 = vmax.f32 %v635_v41, %v636_v42 }
 0x2e0   :  { %v638_v44 = vrot.slane %v637_v43, 2 }
 0x2e2   :  { %v639_v45 = vmax.f32 %v637_v43, %v638_v44 }
 0x2e4   :  { %v640_v46 = vrot.slane %v639_v45, 1 }
 0x2e6   :  { %v641_v47 = vmax.f32 %v639_v45, %v640_v46 }
 0x2e8   :  { %v642_v48 = vsub.f32 %v628_v39, %v641_v47  ;;  %v643_v49 = vsub.f32 %v629_v37, %v641_v47 }
 0x2ea   :  { %v644_v50 = vmul.f32 1.442695, %v642_v48  ;;  %v646_v51 = vmul.f32 1.442695, %v643_v49 }
 0x2ec   :  { %972 = vpow2.f32 %v644_v50 }
 0x2ed   :  { %974 = vpow2.f32 %v646_v51 }
 0x2f4   :  { %v726_v7 = vpop.permute.xlu0 %725 }
 0x2f6   :  { %v973_v52 = vpop.eup %972 }
 0x2f7   :  { %v975_v55 = vpop.eup %974  ;;  %v656_v54 = vmul.f32 %v973_v52, %v651_v53  ;;  %v667_v57 = vsel %vm632_vm15, %v973_v52, 0.0 }
 0x2f8   :  { %v657_v58 = vmul.f32 %v975_v55, %v653_v56  ;;  %v668_v59 = vsel %vm632_vm15, %v975_v55, 0.0 }
 0x2f9   :  { %v658_v60 = vsel %vm632_vm15, %v656_v54, 0.0  ;;  %v669_v61 = vadd.f32 %v668_v59, %v667_v57 }
 0x2fa   :  { %v659_v62 = vsel %vm632_vm15, %v657_v58, 0.0 }
 0x2fb   :  { %v660_v0 = vadd.f32 %v659_v62, %v658_v60  ;;  %v670_v63 = vrot.slane %v669_v61, 4 }
 0x2fd   :  { %v671_v1 = vadd.f32 %v670_v63, %v669_v61  ;;  %v661_v9 = vrot.slane %v660_v0, 4 }
 0x2ff   :  { %v672_v3 = vrot.slane %v671_v1, 2  ;;  %v662_v10 = vadd.f32 %v661_v9, %v660_v0 }
 0x301   :  { %v673_v4 = vadd.f32 %v672_v3, %v671_v1  ;;  %v663_v11 = vrot.slane %v662_v10, 2 }
 0x303   :  { %v674_v5 = vrot.slane %v673_v4, 1  ;;  %v664_v12 = vadd.f32 %v663_v11, %v662_v10 }
 0x305   :  { %v675_v6 = vadd.f32 %v674_v5, %v673_v4  ;;  %v665_v14 = vrot.slane %v664_v12, 1 }
 0x307   :  { %v728_v8 = vsel %vm632_vm15, %v675_v6, %v726_v7  ;;  %v666_v16 = vadd.f32 %v665_v14, %v664_v12 }
 0x308   :  { %976 = vrcp.f32 %v728_v8 }
 0x312   :  { %v977_v2 = vpop.eup %976 }
 0x313   :  { %v730_v13 = vmul.f32 %v977_v2, %v728_v8 }
 0x315   :  { %v731_v15 = vsub.f32 2.0, %v730_v13 }
 0x317   :  { %v732_v18 = vmul.f32 %v977_v2, %v731_v15 }
 0x349   :  { %v721_v17 = vpop.permute.xlu1 %720 }
 0x34a   :  { %v723_v19 = vsel %vm632_vm15, %v666_v16, %v721_v17 }
 0x34b   :  { %v734_v21 = vmul.f32 %v732_v18, %v723_v19 }
 0x34d   :  { %v735_v22 = vadd.f32 %v734_v21, %v733_v20 }
 0x34f   :  { %737 = vst.msk [vmem:[#allocation2] sm:$0x1] %vm736_vm5, %v735_v22 }
 0x350   :  { %989 = shalt.err (!%p986_p4)
}
 0x351   :  { %s990_s27 = scalar_lea.hbm %s1215_s2, 16 }
 0x352   :  { %p991_p5 = scmp.ne.s32.totalorder %s1215_s2, %s990_s27  ;;  %p994_p6 = scmp.lt.u32.totalorder %s990_s27, %s1215_s2 }
 0x354   :  { %p996_p7 = pnand %p994_p6, %p991_p5 }
 0x356   :  { %999 = shalt.err (!%p996_p7)
}
 0x357   :  { %747 = dma.vmem_to_hbm [thread:$0]  %s745_s22, 16, %s1215_s2, [#allocation3]  }
 0x358   :  { %1000 = dma.done.wait [#allocation3], 16  }
 0x359   :  { %1001 = vsyncadd [#allocation3], 4294967280 }
 0x35a   :  { %751 = vsyncpa [#allocation3], 1 }

</bundles_post_ra>
